<compile_context>
chip_gen: v7x
topology: tpu7x:2x2x1
jax: 0.10.0
libtpu: 0.0.40
codegen_flags: <defaults>
</compile_context>

<pallas_src>
import jax
import jax.numpy as jnp
from jax import lax
from jax.experimental import pallas as pl
from jax.experimental.pallas import tpu as pltpu

# ----------------------------- problem sizes --------------------------------
N = 2        # batch
C_IN = 4     # in_channels
C_OUT = 8    # out_channels
L = 16       # input length
K = 3        # kernel_size (stride=1, padding=0, dilation=1 -> Conv1d defaults)
L_OUT = L - K + 1
EPS = 1e-3   # BatchNorm1d eps from the module


def basic_conv1d_kernel(x_ref, w_ref, gamma_ref, beta_ref, o_ref, xcol_ref):
    """Fused Conv1d (single im2col matmul) + BatchNorm1d (batch stats) + ReLU.

    x_ref:     (N, C_IN, L)        raw input, PyTorch NCL layout
    w_ref:     (C_OUT, K*C_IN)     conv weight, w2[o, k*C_IN+c] = w[o, c, k]
    gamma_ref: (C_OUT, 1)          BN gamma
    beta_ref:  (C_OUT, 1)          BN beta
    o_ref:     (C_OUT, N*L_OUT)    lane-dense output slab, column = n*L_OUT + t
    xcol_ref:  (K*C_IN, N*L_OUT)   VMEM scratch holding the im2col'd input
    """
    # ---- in-kernel im2col: xcol[k*C_IN + c, n*L_OUT + t] = x[n, c, t + k].
    # Static-offset value slices + masked stores; lands on XLU/VMEM slots
    # (full slack per the perf review), replaces the wrapper-side XLA fusion
    # and the extra HBM round-trip of a materialized xcol input.
    for n in range(N):
        xn = x_ref[n]                                         # (C_IN, L)
        for k in range(K):
            xcol_ref[k * C_IN:(k + 1) * C_IN,
                     n * L_OUT:(n + 1) * L_OUT] = xn[:, k:k + L_OUT]

    # ---- Conv1d: ONE matmul, f32 accumulation, HIGHEST precision (extra MXU
    # passes are invisible at <1% MXU occupancy; buys back accuracy for free).
    y = jnp.dot(w_ref[...], xcol_ref[...],
                preferred_element_type=jnp.float32,
                precision=lax.Precision.HIGHEST)              # (C_OUT, N*L_OUT)

    # ---- BatchNorm1d in training mode (fresh module): per-channel batch stats
    # over (batch, length) = the lane axis; two-pass biased variance, eps=1e-3.
    inv_m = 1.0 / (N * L_OUT)
    mean = jnp.sum(y, axis=1, keepdims=True) * inv_m          # (C_OUT, 1)
    centered = y - mean
    var = jnp.sum(centered * centered, axis=1, keepdims=True) * inv_m

    scale = gamma_ref[...] * lax.rsqrt(var + EPS)             # (C_OUT, 1)

    # ---- fused affine + ReLU, single lane-dense store of the whole slab.
    o_ref[...] = jnp.maximum(centered * scale + beta_ref[...],
                             0.0).astype(o_ref.dtype)


@jax.jit
def basic_conv1d(x_ncl, w2, gamma_col, beta_col):
    """x_ncl: (N, C_IN, L); w2/gamma/beta pre-packed -> (N, C_OUT, L_OUT)."""
    slab = pl.pallas_call(
        basic_conv1d_kernel,
        out_shape=jax.ShapeDtypeStruct((C_OUT, N * L_OUT), jnp.float32),
        in_specs=[
            pl.BlockSpec(memory_space=pltpu.MemorySpace.VMEM),  # x     (2, 4, 16)
            pl.BlockSpec(memory_space=pltpu.MemorySpace.VMEM),  # w2    (8, 12)
            pl.BlockSpec(memory_space=pltpu.MemorySpace.VMEM),  # gamma (8, 1)
            pl.BlockSpec(memory_space=pltpu.MemorySpace.VMEM),  # beta  (8, 1)
        ],
        out_specs=pl.BlockSpec(memory_space=pltpu.MemorySpace.VMEM),
        scratch_shapes=[pltpu.VMEM((K * C_IN, N * L_OUT), jnp.float32)],
    )(x_ncl, w2, gamma_col, beta_col)
    # slab[o, n*L_OUT + t] -> PyTorch NCL (N, C_OUT, L_OUT); tiny wrapper glue.
    return jnp.transpose(slab.reshape(C_OUT, N, L_OUT), (1, 0, 2))


def pack_params(w_oik, gamma, beta):
    """Parameter-load-time repacking (hoisted out of the per-call jit graph)."""
    # w2[o, k*C_IN + c] = w[o, c, k]
    w2 = jnp.transpose(w_oik, (0, 2, 1)).reshape(C_OUT, K * C_IN)
    return w2, gamma.reshape(C_OUT, 1), beta.reshape(C_OUT, 1)


def reference(x_ncl, w_oik, gamma, beta):
    """Pure-JAX reference matching PyTorch training-mode forward."""
    conv = lax.conv_general_dilated(
        x_ncl, w_oik, window_strides=(1,), padding="VALID",
        dimension_numbers=("NCH", "OIH", "NCH"),
        precision=lax.Precision.HIGHEST,
    )                                                         # (N, C_OUT, L_OUT)
    mean = jnp.mean(conv, axis=(0, 2), keepdims=True)
    var = jnp.mean((conv - mean) ** 2, axis=(0, 2), keepdims=True)  # biased
    y = (conv - mean) * lax.rsqrt(var + EPS)
    y = y * gamma.reshape(1, C_OUT, 1) + beta.reshape(1, C_OUT, 1)
    return jnp.maximum(y, 0.0)


if __name__ == "__main__":
    key = jax.random.PRNGKey(0)
    kx, kw = jax.random.split(key)

    # Deterministic inputs / parameters (shapes per nn.Conv1d / nn.BatchNorm1d):
    x = jax.random.normal(kx, (N, C_IN, L), dtype=jnp.float32)
    bound = 1.0 / float(jnp.sqrt(jnp.float32(C_IN * K)))
    w = jax.random.uniform(kw, (C_OUT, C_IN, K), jnp.float32, -bound, bound)
    gamma = jnp.ones((C_OUT,), jnp.float32)   # BN weight init
    beta = jnp.zeros((C_OUT,), jnp.float32)   # BN bias init

    # Hoisted parameter repack (done once, outside the per-call jit graph).
    w2, gamma_col, beta_col = pack_params(w, gamma, beta)

    out = jax.block_until_ready(basic_conv1d(x, w2, gamma_col, beta_col))
    ref = jax.block_until_ready(reference(x, w, gamma, beta))

    assert out.shape == (N, C_OUT, L_OUT), out.shape
    # HIGHEST-precision matmul + two-pass variance -> tight tolerance.
    assert jnp.allclose(out, ref, rtol=1e-5, atol=1e-5), (
        float(jnp.max(jnp.abs(out - ref))))
    print("KERNEL_OK")
</pallas_src>

<mosaic_0001>
module attributes {stable_mosaic.version = 11 : i64} {
  func.func @basic_conv1d_kernel(%arg0: memref<2x4x16xf32, #tpu.memory_space<vmem>>, %arg1: memref<8x12xf32, #tpu.memory_space<vmem>>, %arg2: memref<8x1xf32, #tpu.memory_space<vmem>>, %arg3: memref<8x1xf32, #tpu.memory_space<vmem>>, %arg4: memref<8x28xf32, #tpu.memory_space<vmem>>, %arg5: memref<12x28xf32, #tpu.memory_space<vmem>>) attributes {dimension_semantics = [], scalar_prefetch = 0 : i64, scratch_operands = 1 : i64, tpu.core_type = #tpu.core_type<tc>} {
    %c0 = arith.constant 0 : index
    %c0_0 = arith.constant 0 : index
    %c0_1 = arith.constant 0 : index
    %0 = vector.load %arg0[%c0, %c0_0, %c0_1] : memref<2x4x16xf32, #tpu.memory_space<vmem>>, vector<1x4x16xf32>
    %1 = vector.shape_cast %0 : vector<1x4x16xf32> to vector<4x16xf32>
    %2 = vector.extract_strided_slice %1 {offsets = [0, 0], sizes = [4, 14], strides = [1, 1]} : vector<4x16xf32> to vector<4x14xf32>
    %c0_2 = arith.constant 0 : index
    %c0_3 = arith.constant 0 : index
    %3 = vector.load %arg5[%c0_2, %c0_3] : memref<12x28xf32, #tpu.memory_space<vmem>>, vector<4x14xf32>
    tpu.vector_store %arg5[%c0_2, %c0_3], %2 {strides = array<i32>} : memref<12x28xf32, #tpu.memory_space<vmem>>, vector<4x14xf32>,
    %4 = vector.extract_strided_slice %1 {offsets = [0, 1], sizes = [4, 14], strides = [1, 1]} : vector<4x16xf32> to vector<4x14xf32>
    %c4 = arith.constant 4 : index
    %c0_4 = arith.constant 0 : index
    %5 = vector.load %arg5[%c4, %c0_4] : memref<12x28xf32, #tpu.memory_space<vmem>>, vector<4x14xf32>
    tpu.vector_store %arg5[%c4, %c0_4], %4 {strides = array<i32>} : memref<12x28xf32, #tpu.memory_space<vmem>>, vector<4x14xf32>,
    %6 = vector.extract_strided_slice %1 {offsets = [0, 2], sizes = [4, 14], strides = [1, 1]} : vector<4x16xf32> to vector<4x14xf32>
    %c8 = arith.constant 8 : index
    %c0_5 = arith.constant 0 : index
    %7 = vector.load %arg5[%c8, %c0_5] : memref<12x28xf32, #tpu.memory_space<vmem>>, vector<4x14xf32>
    tpu.vector_store %arg5[%c8, %c0_5], %6 {strides = array<i32>} : memref<12x28xf32, #tpu.memory_space<vmem>>, vector<4x14xf32>,
    %c1 = arith.constant 1 : index
    %c0_6 = arith.constant 0 : index
    %c0_7 = arith.constant 0 : index
    %8 = vector.load %arg0[%c1, %c0_6, %c0_7] : memref<2x4x16xf32, #tpu.memory_space<vmem>>, vector<1x4x16xf32>
    %9 = vector.shape_cast %8 : vector<1x4x16xf32> to vector<4x16xf32>
    %10 = vector.extract_strided_slice %9 {offsets = [0, 0], sizes = [4, 14], strides = [1, 1]} : vector<4x16xf32> to vector<4x14xf32>
    %c0_8 = arith.constant 0 : index
    %c14 = arith.constant 14 : index
    %11 = vector.load %arg5[%c0_8, %c14] : memref<12x28xf32, #tpu.memory_space<vmem>>, vector<4x14xf32>
    tpu.vector_store %arg5[%c0_8, %c14], %10 {strides = array<i32>} : memref<12x28xf32, #tpu.memory_space<vmem>>, vector<4x14xf32>,
    %12 = vector.extract_strided_slice %9 {offsets = [0, 1], sizes = [4, 14], strides = [1, 1]} : vector<4x16xf32> to vector<4x14xf32>
    %c4_9 = arith.constant 4 : index
    %c14_10 = arith.constant 14 : index
    %13 = vector.load %arg5[%c4_9, %c14_10] : memref<12x28xf32, #tpu.memory_space<vmem>>, vector<4x14xf32>
    tpu.vector_store %arg5[%c4_9, %c14_10], %12 {strides = array<i32>} : memref<12x28xf32, #tpu.memory_space<vmem>>, vector<4x14xf32>,
    %14 = vector.extract_strided_slice %9 {offsets = [0, 2], sizes = [4, 14], strides = [1, 1]} : vector<4x16xf32> to vector<4x14xf32>
    %c8_11 = arith.constant 8 : index
    %c14_12 = arith.constant 14 : index
    %15 = vector.load %arg5[%c8_11, %c14_12] : memref<12x28xf32, #tpu.memory_space<vmem>>, vector<4x14xf32>
    tpu.vector_store %arg5[%c8_11, %c14_12], %14 {strides = array<i32>} : memref<12x28xf32, #tpu.memory_space<vmem>>, vector<4x14xf32>,
    %c0_13 = arith.constant 0 : index
    %c0_14 = arith.constant 0 : index
    %16 = vector.load %arg1[%c0_13, %c0_14] : memref<8x12xf32, #tpu.memory_space<vmem>>, vector<8x12xf32>
    %c0_15 = arith.constant 0 : index
    %c0_16 = arith.constant 0 : index
    %17 = vector.load %arg5[%c0_15, %c0_16] : memref<12x28xf32, #tpu.memory_space<vmem>>, vector<12x28xf32>
    %cst = arith.constant dense<0.000000e+00> : vector<8x28xf32>
    %18 = tpu.matmul %16, %17, %cst {dimension_numbers = #tpu.dot_dimension_numbers<[1], [0], [0], [1], [0, 0, 1, 1], [], []>, precision = #tpu.contract_precision<fp32>} : vector<8x12xf32>, vector<12x28xf32>, vector<8x28xf32> -> vector<8x28xf32>
    %cst_17 = arith.constant dense<0.000000e+00> : vector<8xf32>
    %19 = vector.multi_reduction <add>, %18, %cst_17 [1] : vector<8x28xf32> to vector<8xf32>
    %20 = vector.shape_cast %19 : vector<8xf32> to vector<8x1xf32>
    %cst_18 = arith.constant 0.0357142873 : f32
    %21 = vector.broadcast %cst_18 : f32 to vector<8x1xf32>
    %22 = arith.mulf %20, %21 : vector<8x1xf32>
    %23 = vector.broadcast %22 : vector<8x1xf32> to vector<8x28xf32>
    %24 = arith.subf %18, %23 : vector<8x28xf32>
    %25 = arith.mulf %24, %24 : vector<8x28xf32>
    %cst_19 = arith.constant dense<0.000000e+00> : vector<8xf32>
    %26 = vector.multi_reduction <add>, %25, %cst_19 [1] : vector<8x28xf32> to vector<8xf32>
    %27 = vector.shape_cast %26 : vector<8xf32> to vector<8x1xf32>
    %cst_20 = arith.constant 0.0357142873 : f32
    %28 = vector.broadcast %cst_20 : f32 to vector<8x1xf32>
    %29 = arith.mulf %27, %28 : vector<8x1xf32>
    %c0_21 = arith.constant 0 : index
    %c0_22 = arith.constant 0 : index
    %30 = vector.load %arg2[%c0_21, %c0_22] : memref<8x1xf32, #tpu.memory_space<vmem>>, vector<8x1xf32>
    %cst_23 = arith.constant 1.000000e-03 : f32
    %31 = vector.broadcast %cst_23 : f32 to vector<8x1xf32>
    %32 = arith.addf %29, %31 : vector<8x1xf32>
    %33 = math.rsqrt %32 : vector<8x1xf32>
    %34 = arith.mulf %30, %33 : vector<8x1xf32>
    %35 = vector.broadcast %34 : vector<8x1xf32> to vector<8x28xf32>
    %36 = arith.mulf %24, %35 : vector<8x28xf32>
    %c0_24 = arith.constant 0 : index
    %c0_25 = arith.constant 0 : index
    %37 = vector.load %arg3[%c0_24, %c0_25] : memref<8x1xf32, #tpu.memory_space<vmem>>, vector<8x1xf32>
    %38 = vector.broadcast %37 : vector<8x1xf32> to vector<8x28xf32>
    %39 = arith.addf %36, %38 : vector<8x28xf32>
    %cst_26 = arith.constant 0.000000e+00 : f32
    %40 = vector.broadcast %cst_26 : f32 to vector<8x28xf32>
    %41 = arith.maximumf %39, %40 : vector<8x28xf32>
    %c0_27 = arith.constant 0 : index
    %c0_28 = arith.constant 0 : index
    %42 = vector.load %arg4[%c0_27, %c0_28] : memref<8x28xf32, #tpu.memory_space<vmem>>, vector<8x28xf32>
    tpu.vector_store %arg4[%c0_27, %c0_28], %41 {strides = array<i32>} : memref<8x28xf32, #tpu.memory_space<vmem>>, vector<8x28xf32>,
    return
  }
}

</mosaic_0001>

<bundles_post_ra>
// kernel: basic_conv1d.1
= control target key start
LH: loop header
LB: loop body
LE: loop exit
PB: predicated region body
PF: predicated region fallthrough
CT: control target
= control target key end

     0   :  { %vm18_vm0 = vcmask 109568   ;;  %v650_v2 = vmov 0.0|0.0   ;;  %s651_s19 = smov 126   ;;  %s652_s20 = smov 12   ;;  %vm656_vm1 = vmmov 0   ;;  %v657_v3 = vmov 0.0   ;;  %s720_s0 = inlined_call_operand.vmem [shape: f32[2,4,16], index: 0, kind: input, shape index: {}]   ;;  %s721_s1 = inlined_call_operand.vmem [shape: f32[8,12], index: 1, kind: input, shape index: {}]   ;;  %s722_s3 = inlined_call_operand.vmem [shape: f32[8,1], index: 3, kind: input, shape index: {}]   ;;  %s723_s2 = inlined_call_operand.vmem [shape: f32[8,1], index: 2, kind: input, shape index: {}]   ;;  %s724_s4 = inlined_call_operand.vmem [shape: f32[8,28], index: 4, kind: output, shape index: {}]  }
   0x1   :  { %v17_v0 = vld [vmem:[%s720_s0] sm:$0xf]  ;;  %v549_v1 = vld [vmem:[%s720_s0 + $0x4] sm:$0xf]  ;;  %610 = vmatprep.subr.bf16.mxu1 %v650_v2  ;;  %619 = vmatprep.subr.bf16.mxu0 %v650_v2  ;;  %s653_s21 = smov 127   ;;  %s654_s22 = smov 14  }
   0x2   :  { %25 = vrot.lane.b32.xlu0 %v17_v0, %s651_s19  ;;  %41 = vrot.lane.b32.xlu1 %v549_v1, %s652_s20  ;;  %19 = vst.msk [vmem:[#allocation2] sm:$0xf] %vm18_vm0, %v17_v0  ;;  %s655_s23 = smov 13   ;;  %v45_v4 = vld [vmem:[%s721_s1] sm:$0xff]  ;;  %vm48_vm2 = vcmask 97280   ;;  %vm35_vm3 = vcmask 224368  }
   0x3   :  { %572 = vmatprep.mubr.msk.f32.mxu1 %vm656_vm1, %v657_v3  ;;  %593 = vmatprep.mubr.msk.f32.mxu0 %vm656_vm1, %v657_v3  ;;  %v50_v7 = vsel %vm48_vm2, %v45_v4, 0  ;;  %vm52_vm4 = vcmask 1043456   ;;  %vm515_vm5 = vcmask 228352   ;;  %v658_v44 = vmov 0   ;;  %v536_v45 = vld [vmem:[%s722_s3] sm:$0xff] }
   0x4   :  { %v123_v10 = vand.u32 4294901760, %v50_v7  ;;  %646 = vset.pattern.permute.xlu0 %v658_v44  ;;  %647 = vset.pattern.permute.xlu1 %v658_v44  ;;  %v526_v49 = vld [vmem:[%s723_s2] sm:$0xff] }
   0x6   :  { %21 = vrot.lane.b32.xlu0 %v17_v0, %s653_s21  ;;  %32 = vrot.lane.b32.xlu1 %v549_v1, %s654_s22  ;;  %v124_v12 = vsub.f32 %v50_v7, %v123_v10 }
   0x8   :  { %v125_v16 = vand.u32 4294901760, %v124_v12 }
   0xa   :  { %37 = vrot.lane.b32.xlu0 %v549_v1, %s655_s23  ;;  %v126_v19 = vsub.f32 %v124_v12, %v125_v16 }
   0xc   :  { %v127_v24 = vand.u32 4294901760, %v126_v19 }
  0x74   :  { %v26_v5 = vpop.permute.xlu0 %25  ;;  %v42_v6 = vpop.permute.xlu1 %41 }
  0x75   :  { %28 = vst.msk [vmem:[#allocation2 + $0x8] sm:$0xf] %vm18_vm0, %v26_v5 }
  0x76   :  { %44 = vst.msk [vmem:[#allocation2 + $0x8] sm:$0xf] %vm35_vm3, %v42_v6 }
  0x78   :  { %v22_v8 = vpop.permute.xlu0 %21  ;;  %v33_v9 = vpop.permute.xlu1 %32 }
  0x79   :  { %24 = vst.msk [vmem:[#allocation2 + $0x4] sm:$0xf] %vm18_vm0, %v22_v8 }
  0x7a   :  { %36 = vst.msk [vmem:[#allocation2] sm:$0xf] %vm35_vm3, %v33_v9 }
  0x7c   :  { %v38_v11 = vpop.permute.xlu0 %37 }
  0x7d   :  { %40 = vst.msk [vmem:[#allocation2 + $0x4] sm:$0xf] %vm35_vm3, %v38_v11  ;;  %v47_v13 = vld [vmem:[#allocation2 + $0x8] sm:$0xf] }
  0x7e   :  { %v54_v14 = vsel %vm52_vm4, %v47_v13, 0 }
  0x7f   :  { %v60_v15 = vand.u32 4294901760, %v54_v14 }
  0x81   :  { %v142_v17 = vsub.f32 %v54_v14, %v60_v15 }
  0x83   :  { %v143_v21 = vand.u32 4294901760, %v142_v17 }
  0x84   :  { %v46_v18 = vld [vmem:[#allocation2] sm:$0xff] }
  0x85   :  { %v57_v20 = vand.u32 4294901760, %v46_v18  ;;  %v144_v26 = vsub.f32 %v142_v17, %v143_v21 }
  0x87   :  { %v611_v22 = vpack.c.bf16 %v60_v15, %v57_v20  ;;  %v135_v23 = vsub.f32 %v46_v18, %v57_v20  ;;  %v145_v30 = vand.u32 4294901760, %v144_v26 }
  0x89   :  { %612 = vmatpush3.bf16.msra.mxu1 %v611_v22  ;;  %621 = vmatpush3.bf16.msra.mxu0 %v611_v22  ;;  %v136_v25 = vand.u32 4294901760, %v135_v23  ;;  %v617_v32 = vpack.c.bf16 %v142_v17, %v135_v23 }
  0x8a   :  { %622 = vmatprep.subr.bf16.mxu0 %v650_v2  ;;  %613 = vmatprep.subr.bf16.mxu1 %v650_v2 }
  0x8b   :  { %v623_v27 = vpack.c.bf16 %v143_v21, %v136_v25  ;;  %v137_v28 = vsub.f32 %v135_v23, %v136_v25 }
  0x8c   :  { %573 = vmatmul.mubr.f32.vlgmr.msra.gmra.mrb[0].mxu1 %v127_v24  ;;  %594 = vmatmul.mubr.f32.vlgmr.msra.gmra.mrb[0].mxu0 %v125_v16 }
  0x8d   :  { %624 = vmatpush3.bf16.msra.mxu0 %v623_v27  ;;  %v138_v29 = vand.u32 4294901760, %v137_v28  ;;  %579 = vmatprep.mubr.msk.f32.mxu1 %vm656_vm1, %v657_v3 }
  0x8e   :  { %600 = vmatprep.mubr.msk.f32.mxu0 %vm656_vm1, %v657_v3  ;;  %625 = vmatprep.subr.bf16.mxu0 %v650_v2 }
  0x8f   :  { %v614_v31 = vpack.c.bf16 %v145_v30, %v138_v29 }
  0x91   :  { %615 = vmatpush3.bf16.msra.mxu1 %v614_v31 }
  0x92   :  { %616 = vmatprep.subr.bf16.mxu1 %v650_v2 }
  0x94   :  { %580 = vmatmul.mubr.f32.vlgmr.msra.gmra.mrb[0].mxu1 %v123_v10  ;;  %601 = vmatmul.mubr.f32.vlgmr.msra.gmra.mrb[0].mxu0 %v123_v10 }
  0x95   :  { %627 = vmatpush3.bf16.msra.mxu0 %v611_v22  ;;  %618 = vmatpush3.bf16.msra.mxu1 %v617_v32 }
  0x96   :  { %586 = vmatprep.mubr.msk.f32.mxu1 %vm656_vm1, %v657_v3  ;;  %607 = vmatprep.mubr.msk.f32.mxu0 %vm656_vm1, %v657_v3 }
  0x9c   :  { %587 = vmatmul.mubr.f32.vlgmr.msra.gmra.mrb[0].mxu1 %v124_v12  ;;  %608 = vmatmul.mubr.f32.vlgmr.msra.gmra.mrb[0].mxu0 %v123_v10 }
 0x16f   :  { %v286_v33 = vpop.f32.mrb[0].mxu1  ;;  %v511_v34 = vpop.f32.mrb[0].mxu0 }
 0x170   :  { %v628_v35 = vadd.f32 %v511_v34, %v286_v33  ;;  %v588_v36 = vpop.f32.mrb[1].mxu1  ;;  %v609_v37 = vpop.f32.mrb[1].mxu0 }
 0x172   :  { %v516_v38 = vsel %vm515_vm5, %v628_v35, 0.0 }
 0x173   :  { %517 = vadd.xlane.f32.xlu1 %v516_v38 }
 0x184   :  { %539 = vperm.xlu1 %647, %v536_v45  }
 0x200   :  { %v518_v39 = vpop.xlane.xlu1 %517 }
 0x201   :  { %v519_v40 = vmul.f32 0.035714287, %v518_v39 }
 0x203   :  { %v520_v41 = vsub.f32 %v628_v35, %v519_v40 }
 0x204   :  { %v540_v53 = vpop.permute.xlu1 %539 }
 0x205   :  { %v521_v42 = vmul.f32 %v520_v41, %v520_v41 }
 0x207   :  { %v522_v43 = vsel %vm515_vm5, %v521_v42, 0.0 }
 0x208   :  { %523 = vadd.xlane.f32.xlu0 %v522_v43 }
 0x295   :  { %v524_v46 = vpop.xlane.xlu0 %523 }
 0x296   :  { %v525_v47 = vmul.f32 0.035714287, %v524_v46 }
 0x298   :  { %v527_v48 = vadd.f32 0.001, %v525_v47 }
 0x29a   :  { %648 = vrsqrt.f32 %v527_v48 }
 0x2a4   :  { %v649_v50 = vpop.eup %648 }
 0x2a5   :  { %v529_v51 = vmul.f32 %v649_v50, %v526_v49 }
 0x2a7   :  { %532 = vperm.xlu0 %646, %v529_v51  }
 0x326   :  { %v533_v52 = vpop.permute.xlu0 %532 }
 0x327   :  { %v535_v54 = vmul.f32 %v533_v52, %v520_v41 }
 0x329   :  { %v542_v55 = vadd.f32 %v540_v53, %v535_v54 }
 0x32b   :  { %v543_v56 = vmax.f32 %v542_v55, 0.0 }
 0x32d   :  { %544 = vst.msk [vmem:[%s724_s4] sm:$0xff] %vm515_vm5, %v543_v56 }

</bundles_post_ra>
